<compile_context>
chip_gen: v6e
topology: v6e:2x2x1
jax: 0.10.0
libtpu: 0.0.40
codegen_flags: <defaults>
</compile_context>

<pallas_src>
import functools

import jax
import jax.numpy as jnp
from jax.experimental import pallas as pl
from jax.experimental.pallas import tpu as pltpu


def _round_up(x, m):
    return (x + m - 1) // m * m


# --------------------------------------------------------------------------
# Kernels
# --------------------------------------------------------------------------
def lambda_eval_kernel(x_ref, w_ref, b_ref, mean_ref, logvar_ref, *, L, Lp):
    # Single fused matmul: (TILE_B, Hp) @ (Hp, 2*Lp) + (1, 2*Lp).
    y = (
        jnp.dot(x_ref[...], w_ref[...], preferred_element_type=jnp.float32)
        + b_ref[...]
    )
    # Lane-aligned split inside VMEM; HBM stores happen at true width L.
    mean_ref[...] = y[:, :L]
    logvar_ref[...] = y[:, Lp:Lp + L]


def lambda_train_kernel(x_ref, w_ref, b_ref, eps_ref,
                        mean_ref, logvar_ref, sample_ref, *, L, Lp):
    y = (
        jnp.dot(x_ref[...], w_ref[...], preferred_element_type=jnp.float32)
        + b_ref[...]
    )
    mean = y[:, :L]
    logvar = y[:, Lp:Lp + L]
    mean_ref[...] = mean
    logvar_ref[...] = logvar
    # Reparameterization epilogue in f32 (exp goes to the EUP slot).
    sample_ref[...] = eps_ref[...] * jnp.exp(0.5 * logvar) + mean


# --------------------------------------------------------------------------
# Parameter packing (done once at init in a real model, not per call)
# --------------------------------------------------------------------------
def pack_lambda_params(params, dtype=jnp.float32):
    """Fuse + pad the two linear layers into one lane-aligned weight slab.

    Returns (wf, bf, H, Hp, L, Lp):
      wf: (Hp, 2*Lp)  mean weights in lanes [0:L), logvar in [Lp:Lp+L)
      bf: (1,  2*Lp)  fused bias (always f32; added post-matmul)
    The contraction dim H is zero-padded to a multiple of 8 (sublane-aligned
    weight loads, dense MXU K-feed) - numerically a no-op.
    """
    wm, wv = params['wm'], params['wv']
    bm, bv = params['bm'], params['bv']
    H, L = wm.shape
    Hp = _round_up(H, 8)
    Lp = _round_up(L, 128)
    Wp = 2 * Lp
    wf = jnp.zeros((Hp, Wp), jnp.float32)
    wf = wf.at[:H, :L].set(wm)
    wf = wf.at[:H, Lp:Lp + L].set(wv)
    bf = jnp.zeros((1, Wp), jnp.float32)
    bf = bf.at[:, :L].set(bm)
    bf = bf.at[:, Lp:Lp + L].set(bv)
    return wf.astype(dtype), bf, H, Hp, L, Lp


# --------------------------------------------------------------------------
# VMEM budgeting
# --------------------------------------------------------------------------
def _vmem_bytes(tile_b, Hp, Wp, L, train, x_itemsize, w_itemsize, resident_bufs):
    f32 = 4
    resident = resident_bufs * (Hp * Wp * w_itemsize + Wp * f32)   # weights + bias
    per_step = tile_b * Hp * x_itemsize + 2 * tile_b * L * f32     # x in, mean/logvar out
    if train:
        per_step += 2 * tile_b * L * f32                           # eps in, sample out
    acc = tile_b * Wp * f32                                        # in-kernel f32 slab
    return resident + 2 * per_step + acc                           # streams double-buffered


# --------------------------------------------------------------------------
# Wrapper
# --------------------------------------------------------------------------
def lambda_forward(cell_output, params, eps=None, *, training=False,
                   mode='pretrain', use_bf16=False):
    """Returns (forward_output, latent_mean, latent_logvar)."""
    B, H = cell_output.shape
    use_sample = training and mode != 'pretrain'

    dot_dtype = jnp.bfloat16 if use_bf16 else jnp.float32
    wf, bf, H_, Hp, L, Lp = pack_lambda_params(params, dtype=dot_dtype)
    assert H == H_
    Wp = 2 * Lp
    x_itemsize = jnp.dtype(dot_dtype).itemsize
    w_itemsize = jnp.dtype(dot_dtype).itemsize

    # ---- generation-aware VMEM budget (128 MiB v5e/v6e, 64 MiB/TC v7x) ----
    try:
        vmem_capacity = int(pltpu.get_tpu_info().vmem_capacity_bytes)
    except Exception:
        vmem_capacity = 64 << 20  # conservative (v7x per-TC)
    budget = int(vmem_capacity * 0.45)

    # Weight/bias blocks are grid-invariant -> single-buffered when supported.
    resident_ok = hasattr(pl, "Buffered")
    resident_bufs = 1 if resident_ok else 2

    # ---- batch tiling (weights stay VMEM-resident across grid steps) ----
    tile_b = min(2048, _round_up(B, 8))
    while tile_b > 8 and _vmem_bytes(tile_b, Hp, Wp, L, use_sample,
                                     x_itemsize, w_itemsize, resident_bufs) > budget:
        tile_b = _round_up(max(8, tile_b // 2), 8)
    # v7x: guarantee >= 2 grid steps for large batches so both TensorCores
    # engage under the "parallel" batch axis (no-op on single-TC v5e/v6e).
    if B >= 256:
        tile_b = min(tile_b, _round_up((B + 1) // 2, 8))

    Bp = _round_up(B, tile_b)
    grid = (Bp // tile_b,)

    x = cell_output.astype(dot_dtype) if use_bf16 else cell_output
    if Bp != B or Hp != H:
        x = jnp.pad(x, ((0, Bp - B), (0, Hp - H)))

    needed = _vmem_bytes(tile_b, Hp, Wp, L, use_sample,
                         x_itemsize, w_itemsize, resident_bufs)
    # Always set the limit: v5e's scoped default is only 16 MiB.
    vmem_limit = int(min(max(needed + (8 << 20), 32 << 20),
                         vmem_capacity - (4 << 20)))

    compiler_params = pltpu.CompilerParams(
        dimension_semantics=("parallel",),   # lets v7x shard batch over 2 TCs
        vmem_limit_bytes=vmem_limit,
    )

    def _cost(train):
        flops = 2 * Bp * Hp * Wp + (4 * Bp * L if train else 0)
        bytes_acc = (Bp * Hp * x_itemsize + Hp * Wp * w_itemsize + Wp * 4
                     + 2 * Bp * L * 4 + (2 * Bp * L * 4 if train else 0))
        return pl.CostEstimate(flops=int(flops),
                               transcendentals=int(Bp * L if train else 0),
                               bytes_accessed=int(bytes_acc))

    def _build_and_call(resident):
        if resident:
            w_spec = pl.BlockSpec((Hp, Wp), lambda i: (0, 0),
                                  pipeline_mode=pl.Buffered(1))
            b_spec = pl.BlockSpec((1, Wp), lambda i: (0, 0),
                                  pipeline_mode=pl.Buffered(1))
        else:
            w_spec = pl.BlockSpec((Hp, Wp), lambda i: (0, 0))
            b_spec = pl.BlockSpec((1, Wp), lambda i: (0, 0))
        x_spec = pl.BlockSpec((tile_b, Hp), lambda i: (i, 0))
        # Narrow (true-width) blocks: last dim == full array dim, always legal.
        narrow = lambda: pl.BlockSpec((tile_b, L), lambda i: (i, 0))

        if not use_sample:
            return pl.pallas_call(
                functools.partial(lambda_eval_kernel, L=L, Lp=Lp),
                out_shape=(jax.ShapeDtypeStruct((Bp, L), jnp.float32),
                           jax.ShapeDtypeStruct((Bp, L), jnp.float32)),
                grid=grid,
                in_specs=[x_spec, w_spec, b_spec],
                out_specs=(narrow(), narrow()),
                compiler_params=compiler_params,
                cost_estimate=_cost(False),
            )(x, wf, bf)

        assert eps is not None, "eps must be provided in training mode"
        # TODO(synk): could generate eps in-kernel (pltpu.prng_seed +
        # stateful_normal) to drop this input stream entirely; kept as an
        # explicit input so the host-side reference check stays exact.
        eps_p = eps if Bp == B else jnp.pad(eps, ((0, Bp - B), (0, 0)))
        return pl.pallas_call(
            functools.partial(lambda_train_kernel, L=L, Lp=Lp),
            out_shape=(jax.ShapeDtypeStruct((Bp, L), jnp.float32),
                       jax.ShapeDtypeStruct((Bp, L), jnp.float32),
                       jax.ShapeDtypeStruct((Bp, L), jnp.float32)),
            grid=grid,
            in_specs=[x_spec, w_spec, b_spec, narrow()],
            out_specs=(narrow(), narrow(), narrow()),
            compiler_params=compiler_params,
            cost_estimate=_cost(True),
        )(x, wf, bf, eps_p)

    try:
        outs = _build_and_call(resident_ok)
    except Exception:
        # Fallback if single-buffered pipeline_mode isn't supported here.
        outs = _build_and_call(False)

    if not use_sample:
        mean_p, logvar_p = outs
        mean = mean_p[:B]
        logvar = logvar_p[:B]
        return mean, mean, logvar

    mean_p, logvar_p, sample_p = outs
    return sample_p[:B], mean_p[:B], logvar_p[:B]


# --------------------------------------------------------------------------
# Parameter init (matches nn.Linear + xavier_uniform_ semantics)
# --------------------------------------------------------------------------
def init_lambda_params(key, hidden_size, latent_length):
    k1, k2, k3, k4 = jax.random.split(key, 4)
    xavier_bound = jnp.sqrt(6.0 / (hidden_size + latent_length))
    bias_bound = 1.0 / jnp.sqrt(float(hidden_size))
    # PyTorch weight shape is (latent, hidden); store transposed (hidden, latent).
    wm = jax.random.uniform(k1, (hidden_size, latent_length),
                            minval=-xavier_bound, maxval=xavier_bound,
                            dtype=jnp.float32)
    wv = jax.random.uniform(k2, (hidden_size, latent_length),
                            minval=-xavier_bound, maxval=xavier_bound,
                            dtype=jnp.float32)
    bm = jax.random.uniform(k3, (1, latent_length),
                            minval=-bias_bound, maxval=bias_bound,
                            dtype=jnp.float32)
    bv = jax.random.uniform(k4, (1, latent_length),
                            minval=-bias_bound, maxval=bias_bound,
                            dtype=jnp.float32)
    return {'wm': wm, 'bm': bm, 'wv': wv, 'bv': bv}


if __name__ == "__main__":
    key = jax.random.PRNGKey(0)
    k_param, k_x, k_eps = jax.random.split(key, 3)

    batch = 8
    hidden_size = 32
    latent_length = 16

    params = init_lambda_params(k_param, hidden_size, latent_length)
    cell_output = jax.random.normal(k_x, (batch, hidden_size), dtype=jnp.float32)
    eps = jax.random.normal(k_eps, (batch, latent_length), dtype=jnp.float32)

    # Eval / pretrain path: returns latent_mean (no eps needed).
    out, latent_mean, latent_logvar = lambda_forward(
        cell_output, params, training=False, mode='pretrain')
    jax.block_until_ready(out)

    # Training path with reparameterization sampling.
    sampled, tr_mean, tr_logvar = lambda_forward(
        cell_output, params, eps, training=True, mode='train')
    jax.block_until_ready(sampled)

    # Reference check against plain JAX.
    ref_mean = cell_output @ params['wm'] + params['bm']
    ref_logvar = cell_output @ params['wv'] + params['bv']
    ref_sample = eps * jnp.exp(0.5 * ref_logvar) + ref_mean
    assert jnp.allclose(out, ref_mean, atol=1e-5, rtol=1e-5)
    assert jnp.allclose(latent_mean, ref_mean, atol=1e-5, rtol=1e-5)
    assert jnp.allclose(latent_logvar, ref_logvar, atol=1e-5, rtol=1e-5)
    assert jnp.allclose(tr_mean, ref_mean, atol=1e-5, rtol=1e-5)
    assert jnp.allclose(tr_logvar, ref_logvar, atol=1e-5, rtol=1e-5)
    assert jnp.allclose(sampled, ref_sample, atol=1e-5, rtol=1e-5)

    print("KERNEL_OK")
</pallas_src>

<mosaic_0001>
module attributes {stable_mosaic.version = 11 : i64} {
  func.func @lambda_eval_kernel(%arg0: i32, %arg1: memref<8x32xf32, #tpu.memory_space<vmem>>, %arg2: memref<32x256xf32, #tpu.memory_space<vmem>>, %arg3: memref<1x256xf32, #tpu.memory_space<vmem>>, %arg4: memref<8x16xf32, #tpu.memory_space<vmem>>, %arg5: memref<8x16xf32, #tpu.memory_space<vmem>>) attributes {dimension_semantics = [#tpu.dimension_semantics<parallel>], iteration_bounds = array<i64: 1>, scalar_prefetch = 0 : i64, scratch_operands = 0 : i64, tpu.core_type = #tpu.core_type<tc>, window_params = [{transform_indices = @transform_0, window_bounds = array<i64: 8, 32>}, {pipeline_mode = #tpu.pipeline_mode<synchronous>, transform_indices = @transform_1, window_bounds = array<i64: 32, 256>}, {pipeline_mode = #tpu.pipeline_mode<synchronous>, transform_indices = @transform_2, window_bounds = array<i64: 1, 256>}, {transform_indices = @transform_3, window_bounds = array<i64: 8, 16>}, {transform_indices = @transform_4, window_bounds = array<i64: 8, 16>}]} {
    %c0 = arith.constant 0 : index
    %c0_0 = arith.constant 0 : index
    %0 = vector.load %arg1[%c0, %c0_0] : memref<8x32xf32, #tpu.memory_space<vmem>>, vector<8x32xf32>
    %c0_1 = arith.constant 0 : index
    %c0_2 = arith.constant 0 : index
    %1 = vector.load %arg2[%c0_1, %c0_2] : memref<32x256xf32, #tpu.memory_space<vmem>>, vector<32x256xf32>
    %cst = arith.constant dense<0.000000e+00> : vector<8x256xf32>
    %2 = tpu.matmul %0, %1, %cst {dimension_numbers = #tpu.dot_dimension_numbers<[1], [0], [0], [1], [0, 0, 1, 1], [], []>} : vector<8x32xf32>, vector<32x256xf32>, vector<8x256xf32> -> vector<8x256xf32>
    %c0_3 = arith.constant 0 : index
    %c0_4 = arith.constant 0 : index
    %3 = vector.load %arg3[%c0_3, %c0_4] : memref<1x256xf32, #tpu.memory_space<vmem>>, vector<1x256xf32>
    %4 = vector.broadcast %3 : vector<1x256xf32> to vector<8x256xf32>
    %5 = arith.addf %2, %4 : vector<8x256xf32>
    %6 = vector.extract_strided_slice %5 {offsets = [0, 0], sizes = [8, 16], strides = [1, 1]} : vector<8x256xf32> to vector<8x16xf32>
    %c0_5 = arith.constant 0 : index
    %c0_6 = arith.constant 0 : index
    %7 = vector.load %arg4[%c0_5, %c0_6] : memref<8x16xf32, #tpu.memory_space<vmem>>, vector<8x16xf32>
    tpu.vector_store %arg4[%c0_5, %c0_6], %6 {strides = array<i32>} : memref<8x16xf32, #tpu.memory_space<vmem>>, vector<8x16xf32>,
    %8 = vector.extract_strided_slice %5 {offsets = [0, 128], sizes = [8, 16], strides = [1, 1]} : vector<8x256xf32> to vector<8x16xf32>
    %c0_7 = arith.constant 0 : index
    %c0_8 = arith.constant 0 : index
    %9 = vector.load %arg5[%c0_7, %c0_8] : memref<8x16xf32, #tpu.memory_space<vmem>>, vector<8x16xf32>
    tpu.vector_store %arg5[%c0_7, %c0_8], %8 {strides = array<i32>} : memref<8x16xf32, #tpu.memory_space<vmem>>, vector<8x16xf32>,
    return
  }
  func.func @transform_0(%arg0: i32) -> (i32, i32) {
    %c0_i32 = arith.constant 0 : i32
    %c0_i32_0 = arith.constant 0 : i32
    return %arg0, %c0_i32 : i32, i32
  }
  func.func @transform_1(%arg0: i32) -> (i32, i32) {
    %c0_i32 = arith.constant 0 : i32
    %c0_i32_0 = arith.constant 0 : i32
    %c0_i32_1 = arith.constant 0 : i32
    return %c0_i32, %c0_i32_0 : i32, i32
  }
  func.func @transform_2(%arg0: i32) -> (i32, i32) {
    %c0_i32 = arith.constant 0 : i32
    %c0_i32_0 = arith.constant 0 : i32
    %c0_i32_1 = arith.constant 0 : i32
    return %c0_i32, %c0_i32_0 : i32, i32
  }
  func.func @transform_3(%arg0: i32) -> (i32, i32) {
    %c0_i32 = arith.constant 0 : i32
    %c0_i32_0 = arith.constant 0 : i32
    return %arg0, %c0_i32 : i32, i32
  }
  func.func @transform_4(%arg0: i32) -> (i32, i32) {
    %c0_i32 = arith.constant 0 : i32
    %c0_i32_0 = arith.constant 0 : i32
    return %arg0, %c0_i32 : i32, i32
  }
}

module attributes {stable_mosaic.version = 11 : i64} {
  func.func @lambda_eval_kernel(%arg0: i32, %arg1: memref<8x32xf32, #tpu.memory_space<vmem>>, %arg2: memref<32x256xf32, #tpu.memory_space<vmem>>, %arg3: memref<1x256xf32, #tpu.memory_space<vmem>>, %arg4: memref<8x16xf32, #tpu.memory_space<vmem>>, %arg5: memref<8x16xf32, #tpu.memory_space<vmem>>) attributes {dimension_semantics = [#tpu.dimension_semantics<parallel>], iteration_bounds = array<i64: 1>, scalar_prefetch = 0 : i64, scratch_operands = 0 : i64, tpu.core_type = #tpu.core_type<tc>, window_params = [{transform_indices = @transform_0, window_bounds = array<i64: 8, 32>}, {pipeline_mode = #tpu.pipeline_mode<synchronous>, transform_indices = @transform_1, window_bounds = array<i64: 32, 256>}, {pipeline_mode = #tpu.pipeline_mode<synchronous>, transform_indices = @transform_2, window_bounds = array<i64: 1, 256>}, {transform_indices = @transform_3, window_bounds = array<i64: 8, 16>}, {transform_indices = @transform_4, window_bounds = array<i64: 8, 16>}]} {
    %c0 = arith.constant 0 : index
    %c0_0 = arith.constant 0 : index
    %0 = vector.load %arg1[%c0, %c0_0] : memref<8x32xf32, #tpu.memory_space<vmem>>, vector<8x32xf32>
    %c0_1 = arith.constant 0 : index
    %c0_2 = arith.constant 0 : index
    %1 = vector.load %arg2[%c0_1, %c0_2] : memref<32x256xf32, #tpu.memory_space<vmem>>, vector<32x256xf32>
    %cst = arith.constant dense<0.000000e+00> : vector<8x256xf32>
    %2 = tpu.matmul %0, %1, %cst {dimension_numbers = #tpu.dot_dimension_numbers<[1], [0], [0], [1], [0, 0, 1, 1], [], []>} : vector<8x32xf32>, vector<32x256xf32>, vector<8x256xf32> -> vector<8x256xf32>
    %c0_3 = arith.constant 0 : index
    %c0_4 = arith.constant 0 : index
    %3 = vector.load %arg3[%c0_3, %c0_4] : memref<1x256xf32, #tpu.memory_space<vmem>>, vector<1x256xf32>
    %4 = vector.broadcast %3 : vector<1x256xf32> to vector<8x256xf32>
    %5 = arith.addf %2, %4 : vector<8x256xf32>
    %6 = vector.extract_strided_slice %5 {offsets = [0, 0], sizes = [8, 16], strides = [1, 1]} : vector<8x256xf32> to vector<8x16xf32>
    %c0_5 = arith.constant 0 : index
    %c0_6 = arith.constant 0 : index
    %7 = vector.load %arg4[%c0_5, %c0_6] : memref<8x16xf32, #tpu.memory_space<vmem>>, vector<8x16xf32>
    tpu.vector_store %arg4[%c0_5, %c0_6], %6 {strides = array<i32>} : memref<8x16xf32, #tpu.memory_space<vmem>>, vector<8x16xf32>,
    %8 = vector.extract_strided_slice %5 {offsets = [0, 128], sizes = [8, 16], strides = [1, 1]} : vector<8x256xf32> to vector<8x16xf32>
    %c0_7 = arith.constant 0 : index
    %c0_8 = arith.constant 0 : index
    %9 = vector.load %arg5[%c0_7, %c0_8] : memref<8x16xf32, #tpu.memory_space<vmem>>, vector<8x16xf32>
    tpu.vector_store %arg5[%c0_7, %c0_8], %8 {strides = array<i32>} : memref<8x16xf32, #tpu.memory_space<vmem>>, vector<8x16xf32>,
    return
  }
  func.func @transform_0(%arg0: i32) -> (i32, i32) {
    %c0_i32 = arith.constant 0 : i32
    %c0_i32_0 = arith.constant 0 : i32
    return %arg0, %c0_i32 : i32, i32
  }
  func.func @transform_1(%arg0: i32) -> (i32, i32) {
    %c0_i32 = arith.constant 0 : i32
    %c0_i32_0 = arith.constant 0 : i32
    %c0_i32_1 = arith.constant 0 : i32
    return %c0_i32, %c0_i32_0 : i32, i32
  }
  func.func @transform_2(%arg0: i32) -> (i32, i32) {
    %c0_i32 = arith.constant 0 : i32
    %c0_i32_0 = arith.constant 0 : i32
    %c0_i32_1 = arith.constant 0 : i32
    return %c0_i32, %c0_i32_0 : i32, i32
  }
  func.func @transform_3(%arg0: i32) -> (i32, i32) {
    %c0_i32 = arith.constant 0 : i32
    %c0_i32_0 = arith.constant 0 : i32
    return %arg0, %c0_i32 : i32, i32
  }
  func.func @transform_4(%arg0: i32) -> (i32, i32) {
    %c0_i32 = arith.constant 0 : i32
    %c0_i32_0 = arith.constant 0 : i32
    return %arg0, %c0_i32 : i32, i32
  }
}

</mosaic_0001>

<bundles_post_ra>
// kernel: tpu_custom_call.1
= control target key start
LH: loop header
LB: loop body
LE: loop exit
PB: predicated region body
PF: predicated region fallthrough
CT: control target
= control target key end

     0   :  { %10 = vsyncpa [#allocation3], 0  ;;  %s318_s0 = inlined_call_operand.hbm [shape: f32[8,32], index: 0, kind: input, shape index: {}]   ;;  %s319_s1 = inlined_call_operand.hbm [shape: f32[32,256], index: 1, kind: input, shape index: {}]   ;;  %s320_s2 = inlined_call_operand.vmem [shape: f32[1,256], index: 2, kind: input, shape index: {}]   ;;  %s321_s3 = inlined_call_operand.hbm [shape: f32[8,16], index: 3, kind: output, shape index: {0}]   ;;  %s322_s4 = inlined_call_operand.hbm [shape: f32[8,16], index: 4, kind: output, shape index: {1}]  }
   0x1   :  { %11 = vsyncpa [#allocation6], 0 }
   0x2   :  { %12 = vsyncpa [#allocation4], 0 }
   0x3   :  { %13 = vsyncpa [#allocation9], 0  ;;  %s269_s15 = smov [#allocation2]   ;;  %s270_s17 = smov [#allocation5]  }
   0x4   :  { %s20_s16 = sshll.u32 %s269_s15, 4  ;;  %s29_s18 = sshll.u32 %s270_s17, 4  ;;  %s21_s16 = int_to_ptr.vmem [resolvable:$true] %s20_s16  ;;  %s30_s18 = int_to_ptr.vmem [resolvable:$true] %s29_s18 }
   0x5   :  { %s189_s19 = scalar_lea.vmem %s21_s16, 128  ;;  %p194_p1 = scmp.lt.s32.totalorder %s21_s16, %s21_s16 }
   0x6   :  { %p190_p0 = scmp.ne.s32.totalorder %s21_s16, %s189_s19  ;;  %p195_p2 = scmp.lt.s32.totalorder %s189_s19, %s189_s19 }
   0x8   :  { %p196_p3 = por %p195_p2, %p194_p1 }
   0xa   :  { %p197_p4 = pnand %p196_p3, %p190_p0 }
   0xc   :  { %200 = shalt.err (!%p197_p4)
}
   0xd   :  { %23 = dma.hbm_to_vmem [thread:$0]  %s318_s0, 128, %s21_s16, [#allocation3]  }
   0xe   :  { %s209_s22 = scalar_lea.vmem %s30_s18, 1024  ;;  %p214_p6 = scmp.lt.s32.totalorder %s30_s18, %s30_s18 }
   0xf   :  { %p210_p5 = scmp.ne.s32.totalorder %s30_s18, %s209_s22  ;;  %p215_p7 = scmp.lt.s32.totalorder %s209_s22, %s209_s22 }
  0x11   :  { %p216_p8 = por %p215_p7, %p214_p6 }
  0x13   :  { %p217_p9 = pnand %p216_p8, %p210_p5 }
  0x15   :  { %220 = shalt.err (!%p217_p9)
}
  0x16   :  { %s271_s23 = smov 256   ;;  %s272_s24 = smov 16  }
  0x17   :  { %35 = dma.hbm_to_vmem [thread:$0]  %s319_s1, 1024, %s30_s18, [#allocation6], %s271_s23, %s271_s23, %s272_s24  }
  0x18   :  { %261 = dma.done.wait [#allocation3], 128  }
  0x19   :  { %262 = vsyncadd [#allocation3], 4294967168 }
  0x1a   :  { %263 = dma.done.wait [#allocation6], 1024  }
  0x1b   :  { %264 = vsyncadd [#allocation6], 4294966272  ;;  %v273_v0 = vmov 0.0   ;;  %v52_v1 = vld [vmem:[#allocation5 + $0x38] sm:$0xff]  ;;  %v51_v2 = vld [vmem:[#allocation5 + $0x30] sm:$0xff]  ;;  %vm65_vm0 = vcmask 261120   ;;  %v55_v10 = vlaneseq }
  0x1c   :  { %133 = vmatprep.mubr.f32.mxu0 %v273_v0  ;;  %v50_v3 = vld [vmem:[#allocation5 + $0x28] sm:$0xff]  ;;  %93 = vmatprep.subr.mxu0 %v52_v1  ;;  %v49_v4 = vld [vmem:[#allocation5 + $0x20] sm:$0xff]  ;;  %v48_v5 = vld [vmem:[#allocation5 + $0x18] sm:$0xff]  ;;  %s274_s27 = smov [#allocation7]   ;;  %vm140_vm1 = vcmask 130048   ;;  %s275_s29 = smov [#allocation8]  }
  0x1d   :  { %94 = vmatpush1.msra.mxu0 %v51_v2  ;;  %v47_v6 = vld [vmem:[#allocation5 + $0x10] sm:$0xff]  ;;  %v46_v7 = vld [vmem:[#allocation5 + $0x8] sm:$0xff]  ;;  %v45_v8 = vld [vmem:[#allocation5] sm:$0xff]  ;;  %v56_v11 = vshrl.u32 %v55_v10, 7  ;;  %s149_s28 = sshll.u32 %s274_s27, 4  ;;  %s159_s30 = sshll.u32 %s275_s29, 4  ;;  %s150_s28 = int_to_ptr.vmem [resolvable:$true] %s149_s28  ;;  %s160_s30 = int_to_ptr.vmem [resolvable:$true] %s159_s30 }
  0x1e   :  { %95 = vmatprep.subr.mxu0 %v50_v3  ;;  %v44_v9 = vld [vmem:[#allocation2] sm:$0xff]  ;;  %s221_s5 = scalar_lea.vmem %s150_s28, 128  ;;  %p226_p11 = scmp.lt.s32.totalorder %s150_s28, %s150_s28 }
  0x1f   :  { %96 = vmatpush1.msra.mxu0 %v49_v4  ;;  %v57_v12 = vsub.s32 0, %v56_v11  ;;  %v53_v13 = vld [vmem:[%s320_s2] sm:$0x3]  ;;  %v61_v14 = vsub.s32 1, %v56_v11  ;;  %p222_p10 = scmp.ne.s32.totalorder %s150_s28, %s221_s5  ;;  %p227_p12 = scmp.lt.s32.totalorder %s221_s5, %s221_s5 }
  0x20   :  { %97 = vmatprep.subr.mxu0 %v48_v5 }
  0x21   :  { %98 = vmatpush1.msra.mxu0 %v47_v6  ;;  %v58_v15 = vrot.slane %v53_v13, %v57_v12  ;;  %v62_v16 = vrot.slane %v53_v13, %v61_v14  ;;  %p228_p13 = por %p227_p12, %p226_p11 }
  0x22   :  { %99 = vmatprep.subr.mxu0 %v46_v7 }
  0x23   :  { %100 = vmatpush1.msra.mxu0 %v45_v8  ;;  %p229_p0 = pnand %p228_p13, %p222_p10 }
  0x24   :  { %173 = vmatmul.mubr.msk.f32.vlgmr.msra.gmra.mxu0 %vm65_vm0, %v44_v9 }
  0xe4   :  { %v135_v17 = vpop.f32.mrf.mxu0 }
  0xe5   :  { %v136_v18 = vadd.f32 %v135_v17, %v58_v15 }
  0xe6   :  { %v137_v19 = vpop.f32.mrf.mxu0 }
  0xe7   :  { %v138_v20 = vadd.f32 %v137_v19, %v62_v16  ;;  %141 = vst.msk [vmem:[#allocation7] sm:$0xff] %vm140_vm1, %v136_v18 }
  0xe8   :  { %232 = shalt.err (!%p229_p0)
}
  0xe9   :  { %152 = dma.vmem_to_hbm [thread:$0]  %s150_s28, 128, %s321_s3, [#allocation4]   ;;  %142 = vst.msk [vmem:[#allocation8] sm:$0xff] %vm140_vm1, %v138_v20 }
  0xea   :  { %s241_s7 = scalar_lea.vmem %s160_s30, 128  ;;  %p246_p2 = scmp.lt.s32.totalorder %s160_s30, %s160_s30 }
  0xeb   :  { %p242_p1 = scmp.ne.s32.totalorder %s160_s30, %s241_s7  ;;  %p247_p3 = scmp.lt.s32.totalorder %s241_s7, %s241_s7 }
  0xed   :  { %p248_p4 = por %p247_p3, %p246_p2 }
  0xef   :  { %p249_p5 = pnand %p248_p4, %p242_p1 }
  0xf1   :  { %252 = shalt.err (!%p249_p5)
}
  0xf2   :  { %162 = dma.vmem_to_hbm [thread:$0]  %s160_s30, 128, %s322_s4, [#allocation9]  }
  0xf3   :  { %265 = dma.done.wait [#allocation4], 128  }
  0xf4   :  { %266 = vsyncadd [#allocation4], 4294967168 }
  0xf5   :  { %267 = dma.done.wait [#allocation9], 128  }
  0xf6   :  { %268 = vsyncadd [#allocation9], 4294967168 }
  0xf7   :  { %169 = vsyncpa [#allocation3], 1 }
  0xf8   :  { %170 = vsyncpa [#allocation6], 1 }
  0xf9   :  { %171 = vsyncpa [#allocation4], 1 }
  0xfa   :  { %172 = vsyncpa [#allocation9], 1 }

// kernel: tpu_custom_call.1
= control target key start
LH: loop header
LB: loop body
LE: loop exit
PB: predicated region body
PF: predicated region fallthrough
CT: control target
= control target key end

     0   :  { %10 = vsyncpa [#allocation3], 0  ;;  %s318_s0 = inlined_call_operand.hbm [shape: f32[8,32], index: 0, kind: input, shape index: {}]   ;;  %s319_s1 = inlined_call_operand.hbm [shape: f32[32,256], index: 1, kind: input, shape index: {}]   ;;  %s320_s2 = inlined_call_operand.vmem [shape: f32[1,256], index: 2, kind: input, shape index: {}]   ;;  %s321_s3 = inlined_call_operand.hbm [shape: f32[8,16], index: 3, kind: output, shape index: {0}]   ;;  %s322_s4 = inlined_call_operand.hbm [shape: f32[8,16], index: 4, kind: output, shape index: {1}]  }
   0x1   :  { %11 = vsyncpa [#allocation6], 0 }
   0x2   :  { %12 = vsyncpa [#allocation4], 0 }
   0x3   :  { %13 = vsyncpa [#allocation9], 0  ;;  %s269_s15 = smov [#allocation2]   ;;  %s270_s17 = smov [#allocation5]  }
   0x4   :  { %s20_s16 = sshll.u32 %s269_s15, 4  ;;  %s29_s18 = sshll.u32 %s270_s17, 4  ;;  %s21_s16 = int_to_ptr.vmem [resolvable:$true] %s20_s16  ;;  %s30_s18 = int_to_ptr.vmem [resolvable:$true] %s29_s18 }
   0x5   :  { %s189_s19 = scalar_lea.vmem %s21_s16, 128  ;;  %p194_p1 = scmp.lt.s32.totalorder %s21_s16, %s21_s16 }
   0x6   :  { %p190_p0 = scmp.ne.s32.totalorder %s21_s16, %s189_s19  ;;  %p195_p2 = scmp.lt.s32.totalorder %s189_s19, %s189_s19 }
   0x8   :  { %p196_p3 = por %p195_p2, %p194_p1 }
   0xa   :  { %p197_p4 = pnand %p196_p3, %p190_p0 }
   0xc   :  { %200 = shalt.err (!%p197_p4)
}
   0xd   :  { %23 = dma.hbm_to_vmem [thread:$0]  %s318_s0, 128, %s21_s16, [#allocation3]  }
   0xe   :  { %s209_s22 = scalar_lea.vmem %s30_s18, 1024  ;;  %p214_p6 = scmp.lt.s32.totalorder %s30_s18, %s30_s18 }
   0xf   :  { %p210_p5 = scmp.ne.s32.totalorder %s30_s18, %s209_s22  ;;  %p215_p7 = scmp.lt.s32.totalorder %s209_s22, %s209_s22 }
  0x11   :  { %p216_p8 = por %p215_p7, %p214_p6 }
  0x13   :  { %p217_p9 = pnand %p216_p8, %p210_p5 }
  0x15   :  { %220 = shalt.err (!%p217_p9)
}
  0x16   :  { %s271_s23 = smov 256   ;;  %s272_s24 = smov 16  }
  0x17   :  { %35 = dma.hbm_to_vmem [thread:$0]  %s319_s1, 1024, %s30_s18, [#allocation6], %s271_s23, %s271_s23, %s272_s24  }
  0x18   :  { %261 = dma.done.wait [#allocation3], 128  }
  0x19   :  { %262 = vsyncadd [#allocation3], 4294967168 }
  0x1a   :  { %263 = dma.done.wait [#allocation6], 1024  }
  0x1b   :  { %264 = vsyncadd [#allocation6], 4294966272  ;;  %v273_v0 = vmov 0.0   ;;  %v52_v1 = vld [vmem:[#allocation5 + $0x38] sm:$0xff]  ;;  %v51_v2 = vld [vmem:[#allocation5 + $0x30] sm:$0xff]  ;;  %vm65_vm0 = vcmask 261120   ;;  %v55_v10 = vlaneseq }
  0x1c   :  { %133 = vmatprep.mubr.f32.mxu0 %v273_v0  ;;  %v50_v3 = vld [vmem:[#allocation5 + $0x28] sm:$0xff]  ;;  %93 = vmatprep.subr.mxu0 %v52_v1  ;;  %v49_v4 = vld [vmem:[#allocation5 + $0x20] sm:$0xff]  ;;  %v48_v5 = vld [vmem:[#allocation5 + $0x18] sm:$0xff]  ;;  %s274_s27 = smov [#allocation7]   ;;  %vm140_vm1 = vcmask 130048   ;;  %s275_s29 = smov [#allocation8]  }
  0x1d   :  { %94 = vmatpush1.msra.mxu0 %v51_v2  ;;  %v47_v6 = vld [vmem:[#allocation5 + $0x10] sm:$0xff]  ;;  %v46_v7 = vld [vmem:[#allocation5 + $0x8] sm:$0xff]  ;;  %v45_v8 = vld [vmem:[#allocation5] sm:$0xff]  ;;  %v56_v11 = vshrl.u32 %v55_v10, 7  ;;  %s149_s28 = sshll.u32 %s274_s27, 4  ;;  %s159_s30 = sshll.u32 %s275_s29, 4  ;;  %s150_s28 = int_to_ptr.vmem [resolvable:$true] %s149_s28  ;;  %s160_s30 = int_to_ptr.vmem [resolvable:$true] %s159_s30 }
  0x1e   :  { %95 = vmatprep.subr.mxu0 %v50_v3  ;;  %v44_v9 = vld [vmem:[#allocation2] sm:$0xff]  ;;  %s221_s5 = scalar_lea.vmem %s150_s28, 128  ;;  %p226_p11 = scmp.lt.s32.totalorder %s150_s28, %s150_s28 }
  0x1f   :  { %96 = vmatpush1.msra.mxu0 %v49_v4  ;;  %v57_v12 = vsub.s32 0, %v56_v11  ;;  %v53_v13 = vld [vmem:[%s320_s2] sm:$0x3]  ;;  %v61_v14 = vsub.s32 1, %v56_v11  ;;  %p222_p10 = scmp.ne.s32.totalorder %s150_s28, %s221_s5  ;;  %p227_p12 = scmp.lt.s32.totalorder %s221_s5, %s221_s5 }
  0x20   :  { %97 = vmatprep.subr.mxu0 %v48_v5 }
  0x21   :  { %98 = vmatpush1.msra.mxu0 %v47_v6  ;;  %v58_v15 = vrot.slane %v53_v13, %v57_v12  ;;  %v62_v16 = vrot.slane %v53_v13, %v61_v14  ;;  %p228_p13 = por %p227_p12, %p226_p11 }
  0x22   :  { %99 = vmatprep.subr.mxu0 %v46_v7 }
  0x23   :  { %100 = vmatpush1.msra.mxu0 %v45_v8  ;;  %p229_p0 = pnand %p228_p13, %p222_p10 }
  0x24   :  { %173 = vmatmul.mubr.msk.f32.vlgmr.msra.gmra.mxu0 %vm65_vm0, %v44_v9 }
  0xe4   :  { %v135_v17 = vpop.f32.mrf.mxu0 }
  0xe5   :  { %v136_v18 = vadd.f32 %v135_v17, %v58_v15 }
  0xe6   :  { %v137_v19 = vpop.f32.mrf.mxu0 }
  0xe7   :  { %v138_v20 = vadd.f32 %v137_v19, %v62_v16  ;;  %141 = vst.msk [vmem:[#allocation7] sm:$0xff] %vm140_vm1, %v136_v18 }
  0xe8   :  { %232 = shalt.err (!%p229_p0)
}
  0xe9   :  { %152 = dma.vmem_to_hbm [thread:$0]  %s150_s28, 128, %s321_s3, [#allocation4]   ;;  %142 = vst.msk [vmem:[#allocation8] sm:$0xff] %vm140_vm1, %v138_v20 }
  0xea   :  { %s241_s7 = scalar_lea.vmem %s160_s30, 128  ;;  %p246_p2 = scmp.lt.s32.totalorder %s160_s30, %s160_s30 }
  0xeb   :  { %p242_p1 = scmp.ne.s32.totalorder %s160_s30, %s241_s7  ;;  %p247_p3 = scmp.lt.s32.totalorder %s241_s7, %s241_s7 }
  0xed   :  { %p248_p4 = por %p247_p3, %p246_p2 }
  0xef   :  { %p249_p5 = pnand %p248_p4, %p242_p1 }
  0xf1   :  { %252 = shalt.err (!%p249_p5)
}
  0xf2   :  { %162 = dma.vmem_to_hbm [thread:$0]  %s160_s30, 128, %s322_s4, [#allocation9]  }
  0xf3   :  { %265 = dma.done.wait [#allocation4], 128  }
  0xf4   :  { %266 = vsyncadd [#allocation4], 4294967168 }
  0xf5   :  { %267 = dma.done.wait [#allocation9], 128  }
  0xf6   :  { %268 = vsyncadd [#allocation9], 4294967168 }
  0xf7   :  { %169 = vsyncpa [#allocation3], 1 }
  0xf8   :  { %170 = vsyncpa [#allocation6], 1 }
  0xf9   :  { %171 = vsyncpa [#allocation4], 1 }
  0xfa   :  { %172 = vsyncpa [#allocation9], 1 }

</bundles_post_ra>
